<compile_context>
chip_gen: v6e
topology: v6e:2x2x1
jax: 0.10.0
libtpu: 0.0.40
codegen_flags: <defaults>
</compile_context>

<pallas_src>
import jax
import jax.numpy as jnp
from jax.experimental import pallas as pl
from jax.experimental.pallas import tpu as pltpu


# ----------------------------------------------------------------------------
# Pallas kernels: tiled matmul + bias + ReLU (the conv hot path, via im2col)
# ----------------------------------------------------------------------------
def _mm_bias_relu_single_kernel(x_ref, w_ref, b_ref, o_ref):
    # K fits in one tile: write relu(x @ w + b) straight to the output block.
    acc = jnp.dot(x_ref[...], w_ref[...], preferred_element_type=jnp.float32)
    o_ref[...] = jnp.maximum(acc + b_ref[...], 0.0).astype(o_ref.dtype)


def _mm_bias_relu_acc_kernel(x_ref, w_ref, b_ref, o_ref, acc_ref):
    @pl.when(pl.program_id(2) == 0)
    def _():
        acc_ref[...] = jnp.zeros_like(acc_ref)

    acc_ref[...] += jnp.dot(x_ref[...], w_ref[...],
                            preferred_element_type=jnp.float32)

    @pl.when(pl.program_id(2) == pl.num_programs(2) - 1)
    def _():
        o_ref[...] = jnp.maximum(acc_ref[...] + b_ref[...], 0.0).astype(o_ref.dtype)


def _round_up(x, m):
    return (x + m - 1) // m * m


def _pick_tile(dim, candidates):
    # dim is always a multiple of the smallest candidate (128) when called.
    for c in candidates:
        if dim % c == 0:
            return c
    return candidates[-1]


def matmul_bias_relu(x, w, b, out_dtype=jnp.bfloat16):
    """relu(x @ w + b) on the MXU.  x:[M,K], w:[K,N], b:[1,N] f32 -> [M,N] out_dtype.

    Inputs are cast to bf16 (f32 accumulation); M/K/N are zero-padded to legal
    tile multiples; a single-pass kernel is used when K fits one tile.
    """
    M, K = x.shape
    Kw, N = w.shape
    assert Kw == K and b.shape == (1, N)

    x = x.astype(jnp.bfloat16)
    w = w.astype(jnp.bfloat16)
    b = b.astype(jnp.float32)

    # ---- tile selection -----------------------------------------------------
    # M: pad to a sublane multiple; use 512-row tiles only once M is large.
    M_pad = _round_up(M, 8)
    if M_pad > 512:
        tm = 512
        M_pad = _round_up(M, tm)
    else:
        tm = M_pad
    # N: pad to a lane multiple, largest 128-multiple tile that divides evenly.
    N_pad = _round_up(N, 128)
    tn = _pick_tile(N_pad, (1024, 512, 256, 128))
    # K: single full-dim tile when it fits (cheaper epilogue), else 512-wide tiles.
    if K <= 1024:
        tk, K_pad = K, K
    else:
        K_pad = _round_up(K, 128)
        tk = _pick_tile(K_pad, (512, 256, 128))
    nk = K_pad // tk

    if (M_pad, K_pad) != (M, K):
        x = jnp.pad(x, ((0, M_pad - M), (0, K_pad - K)))
    if (K_pad, N_pad) != (K, N):
        w = jnp.pad(w, ((0, K_pad - K), (0, N_pad - N)))
    if N_pad != N:
        b = jnp.pad(b, ((0, 0), (0, N_pad - N)))

    # ---- explicit VMEM budget (double-buffered ins/outs + f32 accumulator) ---
    out_bytes = jnp.dtype(out_dtype).itemsize
    footprint = (2 * (tm * tk + tk * tn) * 2        # bf16 lhs/rhs, double buffered
                 + 2 * tn * 4                        # bias
                 + 2 * tm * tn * out_bytes           # output, double buffered
                 + (tm * tn * 4 if nk > 1 else 0))   # accumulator scratch
    vmem_limit = int(min(max(footprint + (4 << 20), 16 << 20), 32 << 20))

    if nk == 1:
        grid = (M_pad // tm, N_pad // tn)
        out = pl.pallas_call(
            _mm_bias_relu_single_kernel,
            out_shape=jax.ShapeDtypeStruct((M_pad, N_pad), out_dtype),
            grid_spec=pltpu.PrefetchScalarGridSpec(
                num_scalar_prefetch=0,
                grid=grid,
                in_specs=[
                    pl.BlockSpec((tm, tk), lambda i, j: (i, 0)),
                    pl.BlockSpec((tk, tn), lambda i, j: (0, j)),
                    pl.BlockSpec((1, tn), lambda i, j: (0, j)),
                ],
                out_specs=pl.BlockSpec((tm, tn), lambda i, j: (i, j)),
            ),
            compiler_params=pltpu.CompilerParams(
                dimension_semantics=("parallel", "parallel"),
                vmem_limit_bytes=vmem_limit),
        )(x, w, b)
    else:
        grid = (M_pad // tm, N_pad // tn, nk)
        out = pl.pallas_call(
            _mm_bias_relu_acc_kernel,
            out_shape=jax.ShapeDtypeStruct((M_pad, N_pad), out_dtype),
            grid_spec=pltpu.PrefetchScalarGridSpec(
                num_scalar_prefetch=0,
                grid=grid,
                in_specs=[
                    pl.BlockSpec((tm, tk), lambda i, j, k: (i, k)),
                    pl.BlockSpec((tk, tn), lambda i, j, k: (k, j)),
                    pl.BlockSpec((1, tn), lambda i, j, k: (0, j)),
                ],
                out_specs=pl.BlockSpec((tm, tn), lambda i, j, k: (i, j)),
                scratch_shapes=[pltpu.VMEM((tm, tn), jnp.float32)],
            ),
            compiler_params=pltpu.CompilerParams(
                dimension_semantics=("parallel", "parallel", "arbitrary"),
                vmem_limit_bytes=vmem_limit),
        )(x, w, b)

    if (M_pad, N_pad) != (M, N):
        out = out[:M, :N]
    return out


# ----------------------------------------------------------------------------
# Non-overlapping strided conv (kernel == stride), NHWC in / NHWC out, bf16
# ----------------------------------------------------------------------------
def conv_stride_eq_kernel_nhwc(x_nhwc, w2d, b2d, stride):
    """x:[B,H,W,Cin] bf16, w2d:[s*s*Cin,Cout] bf16 ((dy,dx,c) K-order), b2d:[1,Cout] f32."""
    B, H, W, C = x_nhwc.shape
    s = stride
    Ho, Wo = H // s, W // s
    Cout = w2d.shape[1]
    # im2col: kernel==stride -> each patch is a disjoint rectangular tile.
    # TODO(synk): the s=2 im2col could be fused into the LHS BlockSpec instead of
    # this one bf16 XLA transpose pass; kept outside for lowering robustness.
    patches = x_nhwc.reshape(B, Ho, s, Wo, s, C)
    patches = patches.transpose(0, 1, 3, 2, 4, 5).reshape(B * Ho * Wo, s * s * C)
    out = matmul_bias_relu(patches, w2d, b2d, out_dtype=jnp.bfloat16)
    return out.reshape(B, Ho, Wo, Cout)


# ----------------------------------------------------------------------------
# Exact nearest-neighbor mask downsample (== F.interpolate(..., 'nearest') > bool)
# ----------------------------------------------------------------------------
def mask_nearest_downsample(mask_bool, out_h, out_w):
    B, H, W = mask_bool.shape
    rows = (jnp.arange(out_h) * H) // out_h     # floor(dst * in / out), as PyTorch
    cols = (jnp.arange(out_w) * W) // out_w
    return mask_bool[:, rows][:, :, cols]       # bool, bit-exact vs float round trip


# ----------------------------------------------------------------------------
# BackboneBase equivalent
# ----------------------------------------------------------------------------
class BackboneBasePallas:
    def __init__(self, key, return_interm_layers=True):
        if return_interm_layers:
            self.return_names = ["0", "1", "2"]
            self.strides = [8, 16, 32]
            self.num_channels = [512, 1024, 2048]
        else:
            self.return_names = ["0"]
            self.strides = [32]
            self.num_channels = [2048]
        self.return_interm_layers = return_interm_layers

        # TODO(synk): the real module wraps an *injected* ResNet via an
        # IntermediateLayerGetter; the body here is a deterministic stand-in of
        # strided convs matching the layer2/3/4 channel/stride contract (no .pt load).
        k2, k3, k4 = jax.random.split(key, 3)

        def make_layer(k, cout, cin, s):
            w = jax.random.normal(k, (cout, cin, s, s), jnp.float32) / jnp.sqrt(cin * s * s)
            b = jnp.zeros((cout,), jnp.float32)
            # Pre-pack once for the kernel: [s*s*Cin, Cout] bf16, (dy, dx, c) K-order.
            w2d = jnp.transpose(w, (2, 3, 1, 0)).reshape(s * s * cin, cout)
            return w2d.astype(jnp.bfloat16), b.reshape(1, cout), s

        self.layer2 = make_layer(k2, 512, 3, 8)
        self.layer3 = make_layer(k3, 1024, 512, 2)
        self.layer4 = make_layer(k4, 2048, 1024, 2)

    def forward(self, tensors, mask):
        """tensors:[B,3,H,W] f32, mask:[B,H,W] bool -> {name: (feat NCHW f32, mask bool)}."""
        # One NCHW->NHWC (+ bf16) conversion of the image; activations stay NHWC
        # bf16 between layers, converted back to NCHW f32 only once per output.
        x = jnp.transpose(tensors, (0, 2, 3, 1)).astype(jnp.bfloat16)
        f2 = conv_stride_eq_kernel_nhwc(x, *self.layer2)    # [B, H/8,  W/8,  512 ]
        f3 = conv_stride_eq_kernel_nhwc(f2, *self.layer3)   # [B, H/16, W/16, 1024]
        f4 = conv_stride_eq_kernel_nhwc(f3, *self.layer4)   # [B, H/32, W/32, 2048]
        feats = [f2, f3, f4] if self.return_interm_layers else [f4]

        out = {}
        for name, f in zip(self.return_names, feats):
            x_nchw = jnp.transpose(f, (0, 3, 1, 2)).astype(jnp.float32)
            dmask = mask_nearest_downsample(mask, f.shape[1], f.shape[2])
            out[name] = (x_nchw, dmask)                     # NestedTensor(x, mask)
        return out


if __name__ == "__main__":
    key = jax.random.PRNGKey(0)
    k_params, k_img, k_a, k_b, k_c = jax.random.split(key, 5)

    # ---- small numeric self-checks of the matmul kernel ----------------------
    def ref_mm(xb, wb, bb):
        return jnp.maximum(xb.astype(jnp.float32) @ wb.astype(jnp.float32) + bb, 0.0)

    # single-K path, exercising M/N padding
    xa = jax.random.normal(k_a, (100, 320), jnp.float32)
    wa = jax.random.normal(k_b, (320, 200), jnp.float32)
    ba = jax.random.normal(k_c, (1, 200), jnp.float32)
    got = matmul_bias_relu(xa, wa, ba, out_dtype=jnp.float32)
    ref = ref_mm(xa.astype(jnp.bfloat16), wa.astype(jnp.bfloat16), ba)
    assert got.shape == (100, 200)
    assert bool(jnp.max(jnp.abs(got - ref)) < 0.1), "single-K matmul mismatch"

    # multi-K (accumulator) path
    xm = jax.random.normal(k_a, (64, 2048), jnp.float32)
    wm = jax.random.normal(k_b, (2048, 256), jnp.float32)
    bm = jnp.zeros((1, 256), jnp.float32)
    got = matmul_bias_relu(xm, wm, bm, out_dtype=jnp.float32)
    ref = ref_mm(xm.astype(jnp.bfloat16), wm.astype(jnp.bfloat16), bm)
    assert bool(jnp.max(jnp.abs(got - ref)) < 0.5), "multi-K matmul mismatch"

    # ---- full BackboneBase forward -------------------------------------------
    B, H, W = 2, 64, 64
    images = jax.random.normal(k_img, (B, 3, H, W), jnp.float32)

    # padding masks: True where padded (like NestedTensor.mask)
    mask = jnp.zeros((B, H, W), dtype=bool)
    mask = mask.at[0, :, 48:].set(True)   # image 0: right 16 cols padded
    mask = mask.at[1, 40:, :].set(True)   # image 1: bottom 24 rows padded

    model = BackboneBasePallas(k_params, return_interm_layers=True)
    out = model.forward(images, mask)
    jax.block_until_ready(jax.tree_util.tree_leaves(out))

    # sanity: shapes / dtypes match BackboneBase's contract
    expected = {"0": (512, 8), "1": (1024, 16), "2": (2048, 32)}
    for name, (c, s) in expected.items():
        xo, mo = out[name]
        assert xo.shape == (B, c, H // s, W // s) and xo.dtype == jnp.float32
        assert mo.shape == (B, H // s, W // s) and mo.dtype == jnp.bool_
        # nearest downsample with integer factor == strided top-left pick
        assert bool(jnp.all(mo == mask[:, ::s, ::s]))

    print("KERNEL_OK")
</pallas_src>

<mosaic_0001>
module attributes {stable_mosaic.version = 11 : i64} {
  func.func @_mm_bias_relu_single_kernel(%arg0: i32, %arg1: i32, %arg2: memref<104x320xbf16, #tpu.memory_space<vmem>>, %arg3: memref<320x256xbf16, #tpu.memory_space<vmem>>, %arg4: memref<1x256xf32, #tpu.memory_space<vmem>>, %arg5: memref<104x256xf32, #tpu.memory_space<vmem>>) attributes {dimension_semantics = [#tpu.dimension_semantics<parallel>, #tpu.dimension_semantics<parallel>], iteration_bounds = array<i64: 1, 1>, scalar_prefetch = 0 : i64, scratch_operands = 0 : i64, tpu.core_type = #tpu.core_type<tc>, window_params = [{transform_indices = @transform_0, window_bounds = array<i64: 104, 320>}, {transform_indices = @transform_1, window_bounds = array<i64: 320, 256>}, {transform_indices = @transform_2, window_bounds = array<i64: 1, 256>}, {transform_indices = @transform_3, window_bounds = array<i64: 104, 256>}]} {
    %c0 = arith.constant 0 : index
    %c0_0 = arith.constant 0 : index
    %0 = vector.load %arg2[%c0, %c0_0] : memref<104x320xbf16, #tpu.memory_space<vmem>>, vector<104x320xbf16>
    %c0_1 = arith.constant 0 : index
    %c0_2 = arith.constant 0 : index
    %1 = vector.load %arg3[%c0_1, %c0_2] : memref<320x256xbf16, #tpu.memory_space<vmem>>, vector<320x256xbf16>
    %cst = arith.constant dense<0.000000e+00> : vector<104x256xf32>
    %2 = tpu.matmul %0, %1, %cst {dimension_numbers = #tpu.dot_dimension_numbers<[1], [0], [0], [1], [0, 0, 1, 1], [], []>} : vector<104x320xbf16>, vector<320x256xbf16>, vector<104x256xf32> -> vector<104x256xf32>
    %c0_3 = arith.constant 0 : index
    %c0_4 = arith.constant 0 : index
    %3 = vector.load %arg4[%c0_3, %c0_4] : memref<1x256xf32, #tpu.memory_space<vmem>>, vector<1x256xf32>
    %4 = vector.broadcast %3 : vector<1x256xf32> to vector<104x256xf32>
    %5 = arith.addf %2, %4 : vector<104x256xf32>
    %cst_5 = arith.constant 0.000000e+00 : f32
    %6 = vector.broadcast %cst_5 : f32 to vector<104x256xf32>
    %7 = arith.maximumf %5, %6 : vector<104x256xf32>
    %c0_6 = arith.constant 0 : index
    %c0_7 = arith.constant 0 : index
    %8 = vector.load %arg5[%c0_6, %c0_7] : memref<104x256xf32, #tpu.memory_space<vmem>>, vector<104x256xf32>
    tpu.vector_store %arg5[%c0_6, %c0_7], %7 {strides = array<i32>} : memref<104x256xf32, #tpu.memory_space<vmem>>, vector<104x256xf32>,
    return
  }
  func.func @transform_0(%arg0: i32, %arg1: i32) -> (i32, i32) {
    %c0_i32 = arith.constant 0 : i32
    %c0_i32_0 = arith.constant 0 : i32
    return %arg0, %c0_i32 : i32, i32
  }
  func.func @transform_1(%arg0: i32, %arg1: i32) -> (i32, i32) {
    %c0_i32 = arith.constant 0 : i32
    %c0_i32_0 = arith.constant 0 : i32
    return %c0_i32, %arg1 : i32, i32
  }
  func.func @transform_2(%arg0: i32, %arg1: i32) -> (i32, i32) {
    %c0_i32 = arith.constant 0 : i32
    %c0_i32_0 = arith.constant 0 : i32
    return %c0_i32, %arg1 : i32, i32
  }
  func.func @transform_3(%arg0: i32, %arg1: i32) -> (i32, i32) {
    %c0_i32 = arith.constant 0 : i32
    return %arg0, %arg1 : i32, i32
  }
}

</mosaic_0001>

<bundles_post_ra>
// kernel: tpu_custom_call.1
= control target key start
LH: loop header
LB: loop body
LE: loop exit
PB: predicated region body
PF: predicated region fallthrough
CT: control target
= control target key end

     0   :  { %8 = vsyncpa [#allocation3], 0  ;;  %s1087_s0 = inlined_call_operand.hbm [shape: bf16[104,320], index: 0, kind: input, shape index: {}]   ;;  %s1088_s1 = inlined_call_operand.hbm [shape: bf16[320,256], index: 1, kind: input, shape index: {}]   ;;  %s1089_s2 = inlined_call_operand.vmem [shape: f32[1,256], index: 2, kind: input, shape index: {}]   ;;  %s1090_s3 = inlined_call_operand.hbm [shape: f32[104,256], index: 3, kind: output, shape index: {}]  }
   0x1   :  { %9 = vsyncpa [#allocation6], 0 }
   0x2   :  { %10 = vsyncpa [#allocation4], 0  ;;  %s947_s12 = smov [#allocation2]  }
   0x3   :  { %s16_s13 = sshll.u32 %s947_s12, 4  ;;  %s17_s13 = int_to_ptr.vmem [resolvable:$true] %s16_s13 }
   0x4   :  { %s889_s14 = scalar_lea.vmem %s17_s13, 2496  ;;  %p894_p1 = scmp.lt.s32.totalorder %s17_s13, %s17_s13 }
   0x5   :  { %p890_p0 = scmp.ne.s32.totalorder %s17_s13, %s889_s14  ;;  %p895_p2 = scmp.lt.s32.totalorder %s889_s14, %s889_s14 }
   0x7   :  { %p896_p3 = por %p895_p2, %p894_p1 }
   0x9   :  { %p897_p4 = pnand %p896_p3, %p890_p0 }
   0xb   :  { %900 = shalt.err (!%p897_p4)
}
   0xc   :  { %s948_s15 = smov 192   ;;  %s949_s16 = smov 12  }
   0xd   :  { %22 = dma.hbm_to_vmem [thread:$0]  %s1087_s0, 2496, %s17_s13, [#allocation3], %s948_s15, %s948_s15, %s949_s16  }
   0xe   :  { %s950_s19 = smov [#allocation5]  }
   0xf   :  { %s28_s20 = sshll.u32 %s950_s19, 4  ;;  %s29_s20 = int_to_ptr.vmem [resolvable:$true] %s28_s20 }
  0x10   :  { %s909_s21 = scalar_lea.vmem %s29_s20, 5120  ;;  %p914_p6 = scmp.lt.s32.totalorder %s29_s20, %s29_s20 }
  0x11   :  { %p910_p5 = scmp.ne.s32.totalorder %s29_s20, %s909_s21  ;;  %p915_p7 = scmp.lt.s32.totalorder %s909_s21, %s909_s21 }
  0x13   :  { %p916_p8 = por %p915_p7, %p914_p6 }
  0x15   :  { %p917_p9 = pnand %p916_p8, %p910_p5 }
  0x17   :  { %920 = shalt.err (!%p917_p9)
}
  0x18   :  { %s951_s22 = smov 128   ;;  %s952_s23 = smov 8  }
  0x19   :  { %34 = dma.hbm_to_vmem [thread:$0]  %s1088_s1, 5120, %s29_s20, [#allocation6], %s951_s22, %s951_s22, %s952_s23  }
  0x1a   :  { %941 = dma.done.wait [#allocation3], 2496  }
  0x1b   :  { %942 = vsyncadd [#allocation3], 4294964800 }
  0x1c   :  { %943 = dma.done.wait [#allocation6], 5120  }
  0x1d   :  { %944 = vsyncadd [#allocation6], 4294962176  ;;  %v953_v0 = vmov 0   ;;  %v794_v1 = vld [vmem:[#allocation5 + $0x74] ss:$8 sps:$4 sm:$0xff]   ;;  %vm422_vm0 = vcmask 523264  }
  0x1e   :  { %577 = vmatprep.mubr.bf16.mxu1 %v953_v0  ;;  %v796_v2 = vld [vmem:[#allocation5 + $0x70] ss:$8 sps:$4 sm:$0xff]   ;;  %444 = vmatprep.subr.bf16.mxu0 %v794_v1  ;;  %v797_v3 = vld [vmem:[#allocation5 + $0x64] ss:$8 sps:$4 sm:$0xff]   ;;  %v799_v4 = vld [vmem:[#allocation5 + $0x60] ss:$8 sps:$4 sm:$0xff]  }
  0x1f   :  { %445 = vmatpush1.bf16.msra.mxu0 %v796_v2  ;;  %v800_v5 = vld [vmem:[#allocation5 + $0x54] ss:$8 sps:$4 sm:$0xff]   ;;  %v802_v6 = vld [vmem:[#allocation5 + $0x50] ss:$8 sps:$4 sm:$0xff]   ;;  %v803_v7 = vld [vmem:[#allocation5 + $0x44] ss:$8 sps:$4 sm:$0xff]  }
  0x20   :  { %446 = vmatprep.subr.bf16.mxu0 %v797_v3  ;;  %v805_v8 = vld [vmem:[#allocation5 + $0x40] ss:$8 sps:$4 sm:$0xff]   ;;  %v806_v9 = vld [vmem:[#allocation5 + $0x34] ss:$8 sps:$4 sm:$0xff]   ;;  %v808_v10 = vld [vmem:[#allocation5 + $0x30] ss:$8 sps:$4 sm:$0xff]  }
  0x21   :  { %v809_v11 = vld [vmem:[#allocation5 + $0x24] ss:$8 sps:$4 sm:$0xff]   ;;  %v829_v12 = vld [vmem:[#allocation5 + $0x134] ss:$8 sps:$4 sm:$0xff]   ;;  %v832_v13 = vld [vmem:[#allocation5 + $0x130] ss:$8 sps:$4 sm:$0xff]  }
  0x22   :  { %553 = vmatprep.subr.bf16.mxu1 %v829_v12  ;;  %v811_v14 = vld [vmem:[#allocation5 + $0x20] ss:$8 sps:$4 sm:$0xff]   ;;  %v835_v15 = vld [vmem:[#allocation5 + $0x124] ss:$8 sps:$4 sm:$0xff]   ;;  %v812_v17 = vld [vmem:[#allocation5 + $0x14] ss:$8 sps:$4 sm:$0xff]  }
  0x23   :  { %447 = vmatpush1.bf16.msra.mxu0 %v799_v4  ;;  %554 = vmatpush1.bf16.msra.mxu1 %v832_v13  ;;  %v838_v16 = vld [vmem:[#allocation5 + $0x120] ss:$8 sps:$4 sm:$0xff]   ;;  %v841_v18 = vld [vmem:[#allocation5 + $0x114] ss:$8 sps:$4 sm:$0xff]   ;;  %v814_v19 = vld [vmem:[#allocation5 + $0x10] ss:$8 sps:$4 sm:$0xff]  }
  0x24   :  { %448 = vmatprep.subr.bf16.mxu0 %v800_v5  ;;  %555 = vmatprep.subr.bf16.mxu1 %v835_v15  ;;  %v844_v20 = vld [vmem:[#allocation5 + $0x110] ss:$8 sps:$4 sm:$0xff]   ;;  %v815_v21 = vld [vmem:[#allocation5 + $0x4] ss:$8 sps:$4 sm:$0xff]   ;;  %v817_v23 = vld [vmem:[#allocation5] ss:$8 sps:$4 sm:$0xff]  }
  0x25   :  { %v847_v22 = vld [vmem:[#allocation5 + $0x104] ss:$8 sps:$4 sm:$0xff]   ;;  %v850_v24 = vld [vmem:[#allocation5 + $0x100] ss:$8 sps:$4 sm:$0xff]   ;;  %v818_v25 = vld [vmem:[#allocation5 + $0xf4] ss:$8 sps:$4 sm:$0xff]  }
  0x26   :  { %v857_v26 = vld [vmem:[#allocation2 + $0x4] ss:$12 sps:$4 sm:$0xff]   ;;  %v853_v27 = vld [vmem:[#allocation2 + $0x8] ss:$12 sps:$4 sm:$0xff]   ;;  %v858_v32 = vld [vmem:[#allocation2 + $0x20] ss:$12 sps:$4 sm:$0xff]  }
  0x27   :  { %449 = vmatpush1.bf16.msra.mxu0 %v802_v6  ;;  %556 = vmatpush1.bf16.msra.mxu1 %v838_v16  ;;  %v820_v28 = vld [vmem:[#allocation5 + $0xf0] ss:$8 sps:$4 sm:$0xff]   ;;  %v821_v29 = vld [vmem:[#allocation5 + $0xe4] ss:$8 sps:$4 sm:$0xff]   ;;  %v823_v30 = vld [vmem:[#allocation5 + $0xe0] ss:$8 sps:$4 sm:$0xff]  }
  0x28   :  { %450 = vmatprep.subr.bf16.mxu0 %v803_v7  ;;  %557 = vmatprep.subr.bf16.mxu1 %v841_v18  ;;  %v824_v31 = vld [vmem:[#allocation5 + $0xd4] ss:$8 sps:$4 sm:$0xff]   ;;  %v826_v33 = vld [vmem:[#allocation5 + $0xd0] ss:$8 sps:$4 sm:$0xff]   ;;  %v827_v34 = vld [vmem:[#allocation5 + $0xc4] ss:$8 sps:$4 sm:$0xff]  }
  0x29   :  { %476 = vmatprep.mubr.bf16.mxu0 %v857_v26  ;;  %v831_v35 = vld [vmem:[#allocation5 + $0xc0] ss:$8 sps:$4 sm:$0xff]   ;;  %v833_v36 = vld [vmem:[#allocation5 + $0xb4] ss:$8 sps:$4 sm:$0xff]   ;;  %v837_v38 = vld [vmem:[#allocation5 + $0xb0] ss:$8 sps:$4 sm:$0xff]  }
  0x2a   :  { %v862_v37 = vld [vmem:[#allocation2 + $0x38] ss:$12 sps:$4 sm:$0xff]   ;;  %v839_v39 = vld [vmem:[#allocation5 + $0xa4] ss:$8 sps:$4 sm:$0xff]   ;;  %v866_v42 = vld [vmem:[#allocation2 + $0x50] ss:$12 sps:$4 sm:$0xff]  }
  0x2b   :  { %451 = vmatpush1.bf16.msra.mxu0 %v805_v8  ;;  %558 = vmatpush1.bf16.msra.mxu1 %v844_v20  ;;  %v843_v40 = vld [vmem:[#allocation5 + $0xa0] ss:$8 sps:$4 sm:$0xff]   ;;  %v845_v41 = vld [vmem:[#allocation5 + $0x94] ss:$8 sps:$4 sm:$0xff]   ;;  %v849_v43 = vld [vmem:[#allocation5 + $0x90] ss:$8 sps:$4 sm:$0xff]   ;;  %v112_v8 = vlaneseq }
  0x2c   :  { %452 = vmatprep.subr.bf16.mxu0 %v806_v9  ;;  %559 = vmatprep.subr.bf16.mxu1 %v847_v22  ;;  %v851_v44 = vld [vmem:[#allocation5 + $0x84] ss:$8 sps:$4 sm:$0xff]   ;;  %v854_v45 = vld [vmem:[#allocation5 + $0x80] ss:$8 sps:$4 sm:$0xff]   ;;  %v878_v53 = vld [vmem:[#allocation2 + $0x98] ss:$0 sps:$4 sm:$0xff]  }
  0x2d   :  { %v855_v46 = vld [vmem:[#allocation2] ss:$12 sps:$4 sm:$0xff]   ;;  %v870_v47 = vld [vmem:[#allocation2 + $0x68] ss:$12 sps:$4 sm:$0xff]   ;;  %v861_v49 = vld [vmem:[#allocation2 + $0x18] ss:$12 sps:$4 sm:$0xff]  }
  0x2e   :  { %v859_v48 = vld [vmem:[#allocation2 + $0x1c] ss:$12 sps:$4 sm:$0xff]   ;;  %v874_v50 = vld [vmem:[#allocation2 + $0x80] ss:$12 sps:$4 sm:$0xff]   ;;  %v871_v56 = vld [vmem:[#allocation2 + $0x64] ss:$12 sps:$4 sm:$0xff]  }
  0x2f   :  { %453 = vmatpush1.bf16.msra.mxu0 %v808_v10  ;;  %560 = vmatpush1.bf16.msra.mxu1 %v850_v24  ;;  %v863_v51 = vld [vmem:[#allocation2 + $0x34] ss:$12 sps:$4 sm:$0xff]   ;;  %v865_v52 = vld [vmem:[#allocation2 + $0x30] ss:$12 sps:$4 sm:$0xff]   ;;  %v867_v54 = vld [vmem:[#allocation2 + $0x4c] ss:$12 sps:$4 sm:$0xff]  }
  0x30   :  { %454 = vmatprep.subr.bf16.mxu0 %v809_v11  ;;  %v869_v55 = vld [vmem:[#allocation2 + $0x48] ss:$12 sps:$4 sm:$0xff]   ;;  %v873_v57 = vld [vmem:[#allocation2 + $0x60] ss:$12 sps:$4 sm:$0xff]   ;;  %v877_v60 = vld [vmem:[#allocation2 + $0x78] ss:$12 sps:$4 sm:$0xff]  }
  0x31   :  { %v875_v58 = vld [vmem:[#allocation2 + $0x7c] ss:$12 sps:$4 sm:$0xff]   ;;  %v68_v59 = vld [vmem:[#allocation2 + $0x90] sm:$0xff]  ;;  %v113_v11 = vshrl.u32 %v112_v8, 7  ;;  %v110_v15 = vld [vmem:[%s1089_s2] sm:$0x3] }
  0x32   :  { %777 = vmatmul.mubr.msk.bf16.vlgmr.msra.gmra.mxu1 %vm422_vm0, %v853_v27  ;;  %v735_v61 = vcombine.high %v68_v59, %v68_v59  ;;  %v734_v62 = vcombine.low %v68_v59, %v68_v59  ;;  %s954_s2 = smov [#allocation7]  }
  0x33   :  { %455 = vmatpush1.bf16.msra.mxu0 %v811_v14  ;;  %587 = vmatprep.mubr.bf16.mxu1 %v953_v0  ;;  %v114_v14 = vsub.s32 0, %v113_v11  ;;  %s703_s26 = sshll.u32 %s954_s2, 4  ;;  %s704_s26 = int_to_ptr.vmem [resolvable:$true] %s703_s26 }
  0x34   :  { %456 = vmatprep.subr.bf16.mxu0 %v812_v17  ;;  %v118_v17 = vsub.s32 1, %v113_v11  ;;  %s921_s27 = scalar_lea.vmem %s704_s26, 3328  ;;  %p926_p11 = scmp.lt.s32.totalorder %s704_s26, %s704_s26 }
  0x35   :  { %p922_p10 = scmp.ne.s32.totalorder %s704_s26, %s921_s27  ;;  %p927_p12 = scmp.lt.s32.totalorder %s921_s27, %s921_s27 }
  0x37   :  { %457 = vmatpush1.bf16.msra.mxu0 %v814_v19  ;;  %v1014_v19 = vrot.slane %v110_v15, %v114_v14  ;;  %p928_p13 = por %p927_p12, %p926_p11 }
  0x38   :  { %458 = vmatprep.subr.bf16.mxu0 %v815_v21  ;;  %v1018_v21 = vrot.slane %v110_v15, %v118_v17 }
  0x39   :  { %p929_p0 = pnand %p928_p13, %p922_p10 }
  0x3a   :  { %778 = vmatmul.mubr.msk.bf16.gmra.mxu1 %vm422_vm0, %v858_v32 }
  0x3b   :  { %459 = vmatpush1.bf16.msra.mxu0 %v817_v23  ;;  %597 = vmatprep.mubr.bf16.mxu1 %v953_v0 }
  0x3c   :  { %460 = vmatprep.subr.bf16.mxu0 %v818_v25 }
  0x3f   :  { %461 = vmatpush2.bf16.msra.mxu0 %v820_v28 }
  0x40   :  { %462 = vmatprep.subr.bf16.mxu0 %v821_v29 }
  0x42   :  { %779 = vmatmul.mubr.msk.bf16.gmra.mxu1 %vm422_vm0, %v862_v37 }
  0x43   :  { %463 = vmatpush2.bf16.msra.mxu0 %v823_v30  ;;  %607 = vmatprep.mubr.bf16.mxu1 %v953_v0 }
  0x44   :  { %464 = vmatprep.subr.bf16.mxu0 %v824_v31 }
  0x47   :  { %465 = vmatpush2.bf16.msra.mxu0 %v826_v33 }
  0x48   :  { %466 = vmatprep.subr.bf16.mxu0 %v827_v34 }
  0x4a   :  { %780 = vmatmul.mubr.msk.bf16.gmra.mxu1 %vm422_vm0, %v866_v42 }
  0x4b   :  { %467 = vmatpush2.bf16.msra.mxu0 %v831_v35  ;;  %617 = vmatprep.mubr.bf16.mxu1 %v953_v0 }
  0x4c   :  { %468 = vmatprep.subr.bf16.mxu0 %v833_v36 }
  0x4f   :  { %469 = vmatpush2.bf16.msra.mxu0 %v837_v38 }
  0x50   :  { %470 = vmatprep.subr.bf16.mxu0 %v839_v39 }
  0x52   :  { %781 = vmatmul.mubr.msk.bf16.gmra.mxu1 %vm422_vm0, %v870_v47 }
  0x53   :  { %471 = vmatpush2.bf16.msra.mxu0 %v843_v40  ;;  %627 = vmatprep.mubr.bf16.mxu1 %v953_v0 }
  0x54   :  { %472 = vmatprep.subr.bf16.mxu0 %v845_v41 }
  0x57   :  { %473 = vmatpush2.bf16.msra.mxu0 %v849_v43 }
  0x58   :  { %474 = vmatprep.subr.bf16.mxu0 %v851_v44 }
  0x5a   :  { %782 = vmatmul.mubr.msk.bf16.gmra.mxu1 %vm422_vm0, %v874_v50 }
  0x5b   :  { %475 = vmatpush2.bf16.msra.mxu0 %v854_v45  ;;  %637 = vmatprep.mubr.bf16.mxu1 %v953_v0 }
  0x5e   :  { %477 = vmatmul.mubr.bf16.vlgmr.msra.gmra.mxu0 %v855_v46 }
  0x5f   :  { %486 = vmatprep.mubr.bf16.mxu0 %v859_v48 }
  0x62   :  { %783 = vmatmul.mubr.msk.bf16.gmra.mxu1 %vm422_vm0, %v878_v53 }
  0x66   :  { %487 = vmatmul.mubr.bf16.gmra.mxu0 %v861_v49 }
  0x67   :  { %496 = vmatprep.mubr.bf16.mxu0 %v863_v51 }
  0x6e   :  { %497 = vmatmul.mubr.bf16.gmra.mxu0 %v865_v52 }
  0x6f   :  { %506 = vmatprep.mubr.bf16.mxu0 %v867_v54 }
  0x76   :  { %507 = vmatmul.mubr.bf16.gmra.mxu0 %v869_v55 }
  0x77   :  { %516 = vmatprep.mubr.bf16.mxu0 %v871_v56 }
  0x7e   :  { %517 = vmatmul.mubr.bf16.gmra.mxu0 %v873_v57 }
  0x7f   :  { %526 = vmatprep.mubr.bf16.mxu0 %v875_v58 }
  0x86   :  { %527 = vmatmul.mubr.bf16.gmra.mxu0 %v877_v60 }
  0x87   :  { %536 = vmatprep.mubr.bf16.mxu0 %v735_v61 }
  0x8e   :  { %537 = vmatmul.mubr.bf16.gmra.mxu0 %v734_v62 }
  0xf2   :  { %v579_v63 = vpop.f32.mrf.mxu1 }
  0xf4   :  { %v581_v0 = vpop.f32.mrf.mxu1 }
  0xf6   :  { %v583_v1 = vpop.f32.mrf.mxu1 }
  0xf8   :  { %v585_v2 = vpop.f32.mrf.mxu1 }
  0xfa   :  { %v589_v3 = vpop.f32.mrf.mxu1 }
  0xfc   :  { %v591_v4 = vpop.f32.mrf.mxu1 }
  0xfe   :  { %v593_v5 = vpop.f32.mrf.mxu1 }
 0x100   :  { %v595_v6 = vpop.f32.mrf.mxu1 }
 0x102   :  { %v997_v7 = vpop.f32.mrf.mxu1 }
 0x104   :  { %v999_v9 = vpop.f32.mrf.mxu1 }
 0x106   :  { %v1001_v10 = vpop.f32.mrf.mxu1 }
 0x108   :  { %v1003_v12 = vpop.f32.mrf.mxu1 }
 0x10a   :  { %v1005_v13 = vpop.f32.mrf.mxu1 }
 0x10c   :  { %v1010_v16 = vpop.f32.mrf.mxu1 }
 0x10e   :  { %v1012_v18 = vpop.f32.mrf.mxu1 }
 0x110   :  { %v1016_v20 = vpop.f32.mrf.mxu1 }
 0x112   :  { %v1020_v23 = vpop.f32.mrf.mxu1 }
 0x114   :  { %v1023_v26 = vpop.f32.mrf.mxu1 }
 0x116   :  { %v1026_v30 = vpop.f32.mrf.mxu1 }
 0x118   :  { %v1029_v35 = vpop.f32.mrf.mxu1 }
 0x11a   :  { %v1032_v40 = vpop.f32.mrf.mxu1 }
 0x11c   :  { %v1035_v45 = vpop.f32.mrf.mxu1 }
 0x11e   :  { %v478_v22 = vpop.f32.mrf.mxu0  ;;  %v1038_v50 = vpop.f32.mrf.mxu1 }
 0x11f   :  { %v479_v24 = vadd.f32 %v478_v22, %v1014_v19 }
 0x120   :  { %v480_v25 = vpop.f32.mrf.mxu0  ;;  %v1041_v55 = vpop.f32.mrf.mxu1 }
 0x121   :  { %v580_v27 = vadd.f32 %v579_v63, %v479_v24  ;;  %v481_v28 = vadd.f32 %v480_v25, %v1018_v21 }
 0x122   :  { %v482_v29 = vpop.f32.mrf.mxu0  ;;  %v1044_v60 = vpop.f32.mrf.mxu1 }
 0x123   :  { %v646_v31 = vmax.f32 %v580_v27, 0.0  ;;  %v582_v32 = vadd.f32 %v581_v0, %v481_v28  ;;  %v483_v33 = vadd.f32 %v482_v29, %v1014_v19 }
 0x124   :  { %v484_v34 = vpop.f32.mrf.mxu0 }
 0x125   :  { %672 = vst [vmem:[#allocation7] sm:$0xff] %v646_v31  ;;  %v647_v36 = vmax.f32 %v582_v32, 0.0  ;;  %v584_v37 = vadd.f32 %v583_v1, %v483_v33  ;;  %v485_v38 = vadd.f32 %v484_v34, %v1018_v21  ;;  %v1047_v1 = vpop.f32.mrf.mxu1 }
 0x126   :  { %v488_v39 = vpop.f32.mrf.mxu0 }
 0x127   :  { %673 = vst [vmem:[#allocation7 + $0x8] sm:$0xff] %v647_v36  ;;  %v648_v41 = vmax.f32 %v584_v37, 0.0  ;;  %v586_v42 = vadd.f32 %v585_v2, %v485_v38  ;;  %v489_v43 = vadd.f32 %v488_v39, %v1014_v19  ;;  %v643_v8 = vpop.f32.mrf.mxu1 }
 0x128   :  { %v490_v44 = vpop.f32.mrf.mxu0 }
 0x129   :  { %674 = vst [vmem:[#allocation7 + $0x10] sm:$0xff] %v648_v41  ;;  %v649_v46 = vmax.f32 %v586_v42, 0.0  ;;  %v590_v47 = vadd.f32 %v589_v3, %v489_v43  ;;  %v491_v48 = vadd.f32 %v490_v44, %v1018_v21  ;;  %v644_v17 = vpop.f32.mrf.mxu1 }
 0x12a   :  { %v492_v49 = vpop.f32.mrf.mxu0 }
 0x12b   :  { %675 = vst [vmem:[#allocation7 + $0x18] sm:$0xff] %v649_v46  ;;  %v650_v51 = vmax.f32 %v590_v47, 0.0  ;;  %v592_v52 = vadd.f32 %v591_v4, %v491_v48  ;;  %v493_v53 = vadd.f32 %v492_v49, %v1014_v19 }
 0x12c   :  { %v494_v54 = vpop.f32.mrf.mxu0 }
 0x12d   :  { %676 = vst [vmem:[#allocation7 + $0x20] sm:$0xff] %v650_v51  ;;  %v651_v56 = vmax.f32 %v592_v52, 0.0  ;;  %v594_v57 = vadd.f32 %v593_v5, %v493_v53  ;;  %v495_v58 = vadd.f32 %v494_v54, %v1018_v21 }
 0x12e   :  { %v498_v59 = vpop.f32.mrf.mxu0 }
 0x12f   :  { %677 = vst [vmem:[#allocation7 + $0x28] sm:$0xff] %v651_v56  ;;  %v652_v61 = vmax.f32 %v594_v57, 0.0  ;;  %v596_v62 = vadd.f32 %v595_v6, %v495_v58  ;;  %v499_v63 = vadd.f32 %v498_v59, %v1014_v19 }
 0x130   :  { %v500_v0 = vpop.f32.mrf.mxu0 }
 0x131   :  { %678 = vst [vmem:[#allocation7 + $0x30] sm:$0xff] %v652_v61  ;;  %v653_v2 = vmax.f32 %v596_v62, 0.0  ;;  %v600_v3 = vadd.f32 %v997_v7, %v499_v63  ;;  %v501_v4 = vadd.f32 %v500_v0, %v1018_v21 }
 0x132   :  { %v502_v5 = vpop.f32.mrf.mxu0 }
 0x133   :  { %679 = vst [vmem:[#allocation7 + $0x38] sm:$0xff] %v653_v2  ;;  %v654_v11 = vmax.f32 %v600_v3, 0.0  ;;  %v602_v14 = vadd.f32 %v999_v9, %v501_v4  ;;  %v503_v15 = vadd.f32 %v502_v5, %v1014_v19 }
 0x134   :  { %v504_v6 = vpop.f32.mrf.mxu0 }
 0x135   :  { %680 = vst [vmem:[#allocation7 + $0x40] sm:$0xff] %v654_v11  ;;  %v655_v22 = vmax.f32 %v602_v14, 0.0  ;;  %v604_v24 = vadd.f32 %v1001_v10, %v503_v15  ;;  %v505_v25 = vadd.f32 %v504_v6, %v1018_v21 }
 0x136   :  { %v508_v27 = vpop.f32.mrf.mxu0 }
 0x137   :  { %681 = vst [vmem:[#allocation7 + $0x48] sm:$0xff] %v655_v22  ;;  %v656_v7 = vmax.f32 %v604_v24, 0.0  ;;  %v606_v28 = vadd.f32 %v1003_v12, %v505_v25  ;;  %v509_v29 = vadd.f32 %v508_v27, %v1014_v19 }
 0x138   :  { %v510_v31 = vpop.f32.mrf.mxu0 }
 0x139   :  { %682 = vst [vmem:[#allocation7 + $0x50] sm:$0xff] %v656_v7  ;;  %v657_v9 = vmax.f32 %v606_v28, 0.0  ;;  %v610_v32 = vadd.f32 %v1005_v13, %v509_v29  ;;  %v511_v33 = vadd.f32 %v510_v31, %v1018_v21 }
 0x13a   :  { %v512_v34 = vpop.f32.mrf.mxu0 }
 0x13b   :  { %683 = vst [vmem:[#allocation7 + $0x58] sm:$0xff] %v657_v9  ;;  %v658_v36 = vmax.f32 %v610_v32, 0.0  ;;  %v612_v10 = vadd.f32 %v1010_v16, %v511_v33  ;;  %v513_v37 = vadd.f32 %v512_v34, %v1014_v19 }
 0x13c   :  { %v514_v38 = vpop.f32.mrf.mxu0 }
 0x13d   :  { %684 = vst [vmem:[#allocation7 + $0x60] sm:$0xff] %v658_v36  ;;  %v659_v39 = vmax.f32 %v612_v10, 0.0  ;;  %v614_v12 = vadd.f32 %v1012_v18, %v513_v37  ;;  %v515_v41 = vadd.f32 %v514_v38, %v1018_v21 }
 0x13e   :  { %v518_v42 = vpop.f32.mrf.mxu0 }
 0x13f   :  { %685 = vst [vmem:[#allocation7 + $0x68] sm:$0xff] %v659_v39  ;;  %v660_v43 = vmax.f32 %v614_v12, 0.0  ;;  %v616_v13 = vadd.f32 %v1016_v20, %v515_v41  ;;  %v519_v44 = vadd.f32 %v518_v42, %v1014_v19 }
 0x140   :  { %v520_v46 = vpop.f32.mrf.mxu0 }
 0x141   :  { %686 = vst [vmem:[#allocation7 + $0x70] sm:$0xff] %v660_v43  ;;  %v661_v47 = vmax.f32 %v616_v13, 0.0  ;;  %v620_v16 = vadd.f32 %v1020_v23, %v519_v44  ;;  %v521_v48 = vadd.f32 %v520_v46, %v1018_v21 }
 0x142   :  { %v522_v49 = vpop.f32.mrf.mxu0 }
 0x143   :  { %687 = vst [vmem:[#allocation7 + $0x78] sm:$0xff] %v661_v47  ;;  %v662_v51 = vmax.f32 %v620_v16, 0.0  ;;  %v622_v18 = vadd.f32 %v1023_v26, %v521_v48  ;;  %v523_v52 = vadd.f32 %v522_v49, %v1014_v19 }
 0x144   :  { %v524_v53 = vpop.f32.mrf.mxu0 }
 0x145   :  { %688 = vst [vmem:[#allocation7 + $0x80] sm:$0xff] %v662_v51  ;;  %v663_v54 = vmax.f32 %v622_v18, 0.0  ;;  %v624_v20 = vadd.f32 %v1026_v30, %v523_v52  ;;  %v525_v56 = vadd.f32 %v524_v53, %v1018_v21 }
 0x146   :  { %v528_v57 = vpop.f32.mrf.mxu0 }
 0x147   :  { %689 = vst [vmem:[#allocation7 + $0x88] sm:$0xff] %v663_v54  ;;  %v664_v58 = vmax.f32 %v624_v20, 0.0  ;;  %v626_v23 = vadd.f32 %v1029_v35, %v525_v56  ;;  %v529_v59 = vadd.f32 %v528_v57, %v1014_v19 }
 0x148   :  { %v530_v61 = vpop.f32.mrf.mxu0 }
 0x149   :  { %690 = vst [vmem:[#allocation7 + $0x90] sm:$0xff] %v664_v58  ;;  %v665_v62 = vmax.f32 %v626_v23, 0.0  ;;  %v630_v26 = vadd.f32 %v1032_v40, %v529_v59  ;;  %v531_v63 = vadd.f32 %v530_v61, %v1018_v21 }
 0x14a   :  { %v532_v0 = vpop.f32.mrf.mxu0 }
 0x14b   :  { %691 = vst [vmem:[#allocation7 + $0x98] sm:$0xff] %v665_v62  ;;  %v666_v2 = vmax.f32 %v630_v26, 0.0  ;;  %v632_v30 = vadd.f32 %v1035_v45, %v531_v63  ;;  %v533_v3 = vadd.f32 %v532_v0, %v1014_v19 }
 0x14c   :  { %v534_v4 = vpop.f32.mrf.mxu0 }
 0x14d   :  { %692 = vst [vmem:[#allocation7 + $0xa0] sm:$0xff] %v666_v2  ;;  %v667_v5 = vmax.f32 %v632_v30, 0.0  ;;  %v634_v35 = vadd.f32 %v1038_v50, %v533_v3  ;;  %v535_v8 = vadd.f32 %v534_v4, %v1018_v21 }
 0x14e   :  { %v538_v11 = vpop.f32.mrf.mxu0 }
 0x14f   :  { %693 = vst [vmem:[#allocation7 + $0xa8] sm:$0xff] %v667_v5  ;;  %v668_v14 = vmax.f32 %v634_v35, 0.0  ;;  %v636_v40 = vadd.f32 %v1041_v55, %v535_v8  ;;  %v539_v15 = vadd.f32 %v538_v11, %v1014_v19 }
 0x150   :  { %v540_v6 = vpop.f32.mrf.mxu0 }
 0x151   :  { %694 = vst [vmem:[#allocation7 + $0xb0] sm:$0xff] %v668_v14  ;;  %v669_v17 = vmax.f32 %v636_v40, 0.0  ;;  %v640_v45 = vadd.f32 %v1044_v60, %v539_v15  ;;  %v541_v22 = vadd.f32 %v540_v6, %v1018_v21 }
 0x152   :  { %v542_v24 = vpop.f32.mrf.mxu0 }
 0x153   :  { %695 = vst [vmem:[#allocation7 + $0xb8] sm:$0xff] %v669_v17  ;;  %v670_v50 = vmax.f32 %v640_v45, 0.0  ;;  %v642_v25 = vadd.f32 %v1047_v1, %v541_v22 }
 0x154   :  { %v543_v27 = vpop.f32.mrf.mxu0 }
 0x155   :  { %696 = vst [vmem:[#allocation7 + $0xc0] sm:$0xff] %v670_v50  ;;  %v671_v55 = vmax.f32 %v642_v25, 0.0 }
 0x157   :  { %697 = vst [vmem:[#allocation7 + $0xc8] sm:$0xff] %v671_v55 }
 0x158   :  { %932 = shalt.err (!%p929_p0)
}
 0x159   :  { %s955_s28 = smov 256   ;;  %s956_s29 = smov 16  }
 0x15a   :  { %709 = dma.vmem_to_hbm [thread:$0]  %s704_s26, 3328, %s1090_s3, [#allocation4], %s955_s28, %s955_s28, %s956_s29  }
 0x15b   :  { %945 = dma.done.wait [#allocation4], 3328  }
 0x15c   :  { %946 = vsyncadd [#allocation4], 4294963968 }
 0x15d   :  { %713 = vsyncpa [#allocation3], 1 }
 0x15e   :  { %714 = vsyncpa [#allocation6], 1 }
 0x15f   :  { %715 = vsyncpa [#allocation4], 1 }

</bundles_post_ra>
